<compile_context>
chip_gen: v6e
topology: v6e:2x2x1
jax: 0.10.0
libtpu: 0.0.40
codegen_flags: <defaults>
</compile_context>

<pallas_src>
import math
import functools

import jax
import jax.numpy as jnp
from jax import lax
from jax.experimental import pallas as pl
from jax.experimental.pallas import tpu as pltpu


def build_pe(d_model: int, max_len: int = 1000) -> jnp.ndarray:
    """Deterministic sin/cos positional-encoding buffer, shape (max_len, 1, d_model)."""
    position = jnp.arange(max_len, dtype=jnp.float32)[:, None]          # (max_len, 1)
    if d_model % 2 == 0:
        div_term = jnp.exp(
            jnp.arange(0, d_model, 2, dtype=jnp.float32) * (-math.log(10000.0) / d_model))
        sin_part = jnp.sin(position * div_term)
        cos_part = jnp.cos(position * div_term)
    else:
        div_term = jnp.exp(
            jnp.arange(0, d_model + 1, 2, dtype=jnp.float32) * (-math.log(10000.0) / d_model))
        sin_part = jnp.sin(position * div_term)
        cos_part = jnp.cos(position * div_term[:-1])
    pe = jnp.zeros((max_len, d_model), dtype=jnp.float32)
    pe = pe.at[:, 0::2].set(sin_part)
    pe = pe.at[:, 1::2].set(cos_part)
    return pe[:, None, :]                                                # (max_len, 1, d_model)


def _pe_kernel(p, training, seed, n_slices, slice_w, use_hw_prng,
               x_ref, pe_ref, o_ref):
    """x_ref / o_ref: (tile_S, n_slices*slice_w) lane-dense view; pe_ref: (tile_S, slice_w)."""
    pe_row = pe_ref[...]                                   # already x.dtype (pre-cast in wrapper)
    tile_s = x_ref.shape[0]
    do_dropout = training and p > 0.0

    if do_dropout:
        thresh24 = jnp.uint32(int(round(p * (1 << 24))))   # drop if low-24 bits < thresh
        scale = jnp.asarray(1.0 / (1.0 - p), o_ref.dtype)
        if use_hw_prng:
            # Distinct stream per row tile; bits are consumed slice-by-slice below.
            pltpu.prng_seed(jnp.int32(seed & 0x7FFFFFFF), pl.program_id(0))

    # Static loop over batch slices.  n_slices == 1 when pe was pre-broadcast (or B == 1);
    # otherwise slice_w == D is a multiple of 128, so every slice is lane-aligned.
    # NOTE: on a ragged last row tile the padded rows also run dropout; Pallas masks the
    # writeback, so this is harmless (do not "fix" it into an OOB read on a manual-DMA port).
    for b in range(n_slices):
        sl = pl.ds(b * slice_w, slice_w)
        y = x_ref[:, sl] + pe_row
        if do_dropout:
            if use_hw_prng:
                bits = pltpu.bitcast(pltpu.prng_random_bits((tile_s, slice_w)), jnp.uint32)
            else:
                # TODO(synk): portable single-round hash fallback (interpret mode only);
                # cannot bit-match torch's RNG stream, only its distribution/semantics.
                rows = (lax.broadcasted_iota(jnp.int32, (tile_s, slice_w), 0)
                        + pl.program_id(0) * tile_s)
                cols = (lax.broadcasted_iota(jnp.int32, (tile_s, slice_w), 1)
                        + b * slice_w)
                ctr = rows * (n_slices * slice_w) + cols
                h = ctr.astype(jnp.uint32) ^ jnp.uint32(seed & 0xFFFFFFFF)
                h = (h ^ (h >> 16)) * jnp.uint32(0x7FEB352D)
                bits = h ^ (h >> 15)
            keep = (bits & jnp.uint32(0x00FFFFFF)) >= thresh24
            y = jnp.where(keep, y * scale, jnp.zeros_like(y))
        o_ref[:, sl] = y.astype(o_ref.dtype)


def _vmem_budget():
    """(target_tile_bytes, vmem_limit_bytes) sized per TPU generation."""
    try:
        cap = int(getattr(pltpu.get_tpu_info(), "vmem_capacity_bytes", 64 << 20))
    except Exception:
        cap = 64 << 20                         # conservative (v7x-sized) fallback
    if cap >= (96 << 20):                      # v5e / v6e: 128 MiB physical VMEM
        return 6 << 20, 64 << 20
    return 3 << 20, 40 << 20                   # v7x: 64 MiB per TensorCore


def positional_encoding(x, pe, *, p: float = 0.1, training: bool = False, seed: int = 0,
                        target_tile_bytes=None, vmem_limit_bytes=None,
                        use_hw_prng=None, donate_x: bool = False):
    """x: (S, B, D); pe: (max_len, 1, D).  Returns dropout(x + pe[:S] repeated over B)."""
    S, B, D = x.shape
    max_len = pe.shape[0]
    assert S <= max_len, "sequence longer than positional-encoding buffer"
    L = B * D

    if use_hw_prng is None:
        use_hw_prng = jax.default_backend() == "tpu"
    if target_tile_bytes is None or vmem_limit_bytes is None:
        tt, vl = _vmem_budget()
        target_tile_bytes = tt if target_tile_bytes is None else target_tile_bytes
        vmem_limit_bytes = vl if vmem_limit_bytes is None else vmem_limit_bytes

    itemsize = jnp.dtype(x.dtype).itemsize
    sub = {4: 8, 2: 16, 1: 32}.get(itemsize, 8)      # dtype-native sublane multiple

    x2 = x.reshape(S, L)                             # free contiguous reshape -> lane-dense view
    pe2 = pe.reshape(max_len, D).astype(x.dtype)     # pre-cast once (halves bf16 pe DMA)

    # Row-tile size: big enough to amortize the ~0.35us per-grid-step overhead within the
    # VMEM budget, small enough to keep >= ~8 grid steps (v7x 2-TC sharding + pipelining).
    if S <= sub:
        tile_S = S
    else:
        row_bytes = max(1, L * itemsize)
        cap = max(sub, (target_tile_bytes // row_bytes) // sub * sub)
        min_tiles = 8
        want = -(-S // min_tiles)                    # ceil(S / min_tiles)
        want = max(sub, -(-want // sub) * sub)       # round up to sublane multiple
        tile_S = min(cap, want, (S // sub) * sub)

    # Batch broadcast of pe:
    #  * D % 128 == 0 or B == 1: per-batch lane-aligned slices inside the kernel.
    #  * otherwise (small-D regime): pre-broadcast pe to (S, L) so the kernel output stays
    #    lane-dense (unmasked vst) at the cost of a small extra pe read.
    if B == 1 or D % 128 == 0:
        n_slices, slice_w = B, D
        pe_arg = pe2 if tile_S % 8 == 0 else pe2[:S]   # full buffer; index_map picks rows
    else:
        n_slices, slice_w = 1, L
        pe_arg = jnp.broadcast_to(pe2[:S][:, None, :], (S, B, D)).reshape(S, L)

    grid = (pl.cdiv(S, tile_S),)
    kernel = functools.partial(_pe_kernel, float(p), bool(training), int(seed),
                               n_slices, slice_w, bool(use_hw_prng))

    out2 = pl.pallas_call(
        kernel,
        out_shape=jax.ShapeDtypeStruct((S, L), x.dtype),
        grid=grid,
        in_specs=[
            pl.BlockSpec((tile_S, L), lambda i: (i, 0)),
            pl.BlockSpec((tile_S, slice_w), lambda i: (i, 0)),
        ],
        out_specs=pl.BlockSpec((tile_S, L), lambda i: (i, 0)),
        input_output_aliases={0: 0} if donate_x else {},
        compiler_params=pltpu.CompilerParams(
            dimension_semantics=("parallel",),       # shard row tiles across v7x's 2 TCs
            vmem_limit_bytes=vmem_limit_bytes,
        ),
    )(x2, pe_arg)

    return out2.reshape(S, B, D)


if __name__ == "__main__":
    S, B, D = 8, 2, 32          # (seq_len, batch, d_model)
    MAX_LEN = 1000

    key = jax.random.PRNGKey(0)
    x = jax.random.normal(key, (S, B, D), dtype=jnp.float32)
    pe = build_pe(D, MAX_LEN)

    # Eval mode: dropout is identity -> must equal x + pe[:S] broadcast over batch.
    out_eval = jax.block_until_ready(positional_encoding(x, pe, p=0.1, training=False))
    ref = x + pe[:S]
    assert out_eval.shape == (S, B, D)
    assert jnp.allclose(out_eval, ref, atol=1e-6, rtol=1e-6), "eval-mode mismatch"

    # Train mode: every element is either 0 (dropped) or (x+pe)/(1-p) (kept).
    out_train = jax.block_until_ready(
        positional_encoding(x, pe, p=0.1, training=True, seed=1234))
    assert out_train.shape == (S, B, D)
    scale = 1.0 / (1.0 - 0.1)
    ok = jnp.isclose(out_train, 0.0, atol=1e-6) | jnp.isclose(
        out_train, ref * scale, rtol=1e-5, atol=1e-6)
    assert bool(jnp.all(ok)), "train-mode dropout values inconsistent"

    print("KERNEL_OK")
</pallas_src>

<mosaic_0001>
module attributes {stable_mosaic.version = 11 : i64} {
  func.func @_pe_kernel(%arg0: i32, %arg1: memref<8x64xf32, #tpu.memory_space<vmem>>, %arg2: memref<8x64xf32, #tpu.memory_space<vmem>>, %arg3: memref<8x64xf32, #tpu.memory_space<vmem>>) attributes {dimension_semantics = [#tpu.dimension_semantics<parallel>], iteration_bounds = array<i64: 1>, scalar_prefetch = 0 : i64, scratch_operands = 0 : i64, tpu.core_type = #tpu.core_type<tc>, window_params = [{transform_indices = @transform_0, window_bounds = array<i64: 8, 64>}, {transform_indices = @transform_1, window_bounds = array<i64: 8, 64>}, {transform_indices = @transform_2, window_bounds = array<i64: 8, 64>}]} {
    %c0 = arith.constant 0 : index
    %c0_0 = arith.constant 0 : index
    %0 = vector.load %arg2[%c0, %c0_0] : memref<8x64xf32, #tpu.memory_space<vmem>>, vector<8x64xf32>
    %c0_1 = arith.constant 0 : index
    %c0_2 = arith.constant 0 : index
    %1 = vector.load %arg1[%c0_1, %c0_2] : memref<8x64xf32, #tpu.memory_space<vmem>>, vector<8x64xf32>
    %2 = arith.addf %1, %0 : vector<8x64xf32>
    %c0_3 = arith.constant 0 : index
    %c0_4 = arith.constant 0 : index
    %3 = vector.load %arg3[%c0_3, %c0_4] : memref<8x64xf32, #tpu.memory_space<vmem>>, vector<8x64xf32>
    tpu.vector_store %arg3[%c0_3, %c0_4], %2 {strides = array<i32>} : memref<8x64xf32, #tpu.memory_space<vmem>>, vector<8x64xf32>,
    return
  }
  func.func @transform_0(%arg0: i32) -> (i32, i32) {
    %c0_i32 = arith.constant 0 : i32
    %c0_i32_0 = arith.constant 0 : i32
    return %arg0, %c0_i32 : i32, i32
  }
  func.func @transform_1(%arg0: i32) -> (i32, i32) {
    %c0_i32 = arith.constant 0 : i32
    %c0_i32_0 = arith.constant 0 : i32
    return %arg0, %c0_i32 : i32, i32
  }
  func.func @transform_2(%arg0: i32) -> (i32, i32) {
    %c0_i32 = arith.constant 0 : i32
    %c0_i32_0 = arith.constant 0 : i32
    return %arg0, %c0_i32 : i32, i32
  }
}

</mosaic_0001>

<bundles_post_ra>
// kernel: tpu_custom_call.1
= control target key start
LH: loop header
LB: loop body
LE: loop exit
PB: predicated region body
PF: predicated region fallthrough
CT: control target
= control target key end

     0   :  { %7 = vsyncpa [#allocation3], 0  ;;  %s153_s0 = inlined_call_operand.hbm [shape: f32[8,64], index: 0, kind: input, shape index: {}]   ;;  %s154_s1 = inlined_call_operand.hbm [shape: f32[8,64], index: 1, kind: input, shape index: {}]   ;;  %s155_s2 = inlined_call_operand.hbm [shape: f32[8,64], index: 2, kind: output, shape index: {}]  }
   0x1   :  { %8 = vsyncpa [#allocation6], 0 }
   0x2   :  { %9 = vsyncpa [#allocation4], 0  ;;  %s126_s9 = smov [#allocation2]   ;;  %s127_s11 = smov [#allocation5]  }
   0x3   :  { %s16_s10 = sshll.u32 %s126_s9, 4  ;;  %s26_s12 = sshll.u32 %s127_s11, 4  ;;  %s17_s10 = int_to_ptr.vmem [resolvable:$true] %s16_s10  ;;  %s27_s12 = int_to_ptr.vmem [resolvable:$true] %s26_s12 }
   0x4   :  { %s68_s13 = scalar_lea.vmem %s17_s10, 128  ;;  %p73_p1 = scmp.lt.s32.totalorder %s17_s10, %s17_s10 }
   0x5   :  { %p69_p0 = scmp.ne.s32.totalorder %s17_s10, %s68_s13  ;;  %p74_p2 = scmp.lt.s32.totalorder %s68_s13, %s68_s13 }
   0x7   :  { %p75_p3 = por %p74_p2, %p73_p1 }
   0x9   :  { %p76_p4 = pnand %p75_p3, %p69_p0 }
   0xb   :  { %79 = shalt.err (!%p76_p4)
}
   0xc   :  { %19 = dma.hbm_to_vmem [thread:$0]  %s153_s0, 128, %s17_s10, [#allocation3]  }
   0xd   :  { %s88_s16 = scalar_lea.vmem %s27_s12, 128  ;;  %p93_p6 = scmp.lt.s32.totalorder %s27_s12, %s27_s12 }
   0xe   :  { %p89_p5 = scmp.ne.s32.totalorder %s27_s12, %s88_s16  ;;  %p94_p7 = scmp.lt.s32.totalorder %s88_s16, %s88_s16 }
  0x10   :  { %p95_p8 = por %p94_p7, %p93_p6 }
  0x12   :  { %p96_p9 = pnand %p95_p8, %p89_p5 }
  0x14   :  { %99 = shalt.err (!%p96_p9)
}
  0x15   :  { %29 = dma.hbm_to_vmem [thread:$0]  %s154_s1, 128, %s27_s12, [#allocation6]  }
  0x16   :  { %120 = dma.done.wait [#allocation3], 128  }
  0x17   :  { %121 = vsyncadd [#allocation3], 4294967168 }
  0x18   :  { %122 = dma.done.wait [#allocation6], 128  }
  0x19   :  { %123 = vsyncadd [#allocation6], 4294967168  ;;  %s128_s19 = smov [#allocation7]   ;;  %v36_v0 = vld [vmem:[#allocation5] sm:$0xff]  ;;  %v37_v1 = vld [vmem:[#allocation2] sm:$0xff]  ;;  %vm39_vm0 = vcmask 523264  }
  0x1a   :  { %s47_s20 = sshll.u32 %s128_s19, 4  ;;  %v38_v2 = vadd.f32 %v37_v1, %v36_v0  ;;  %s48_s20 = int_to_ptr.vmem [resolvable:$true] %s47_s20 }
  0x1b   :  { %s100_s0 = scalar_lea.vmem %s48_s20, 128  ;;  %p105_p11 = scmp.lt.s32.totalorder %s48_s20, %s48_s20 }
  0x1c   :  { %40 = vst.msk [vmem:[#allocation7] sm:$0xff] %vm39_vm0, %v38_v2  ;;  %p101_p10 = scmp.ne.s32.totalorder %s48_s20, %s100_s0  ;;  %p106_p12 = scmp.lt.s32.totalorder %s100_s0, %s100_s0 }
  0x1e   :  { %p107_p13 = por %p106_p12, %p105_p11 }
  0x20   :  { %p108_p0 = pnand %p107_p13, %p101_p10 }
  0x22   :  { %111 = shalt.err (!%p108_p0)
}
  0x23   :  { %50 = dma.vmem_to_hbm [thread:$0]  %s48_s20, 128, %s155_s2, [#allocation4]  }
  0x24   :  { %124 = dma.done.wait [#allocation4], 128  }
  0x25   :  { %125 = vsyncadd [#allocation4], 4294967168 }
  0x26   :  { %54 = vsyncpa [#allocation3], 1 }
  0x27   :  { %55 = vsyncpa [#allocation6], 1 }
  0x28   :  { %56 = vsyncpa [#allocation4], 1 }

</bundles_post_ra>
